<compile_context>
chip_gen: v6e
topology: v6e:2x2x1
jax: 0.10.0
libtpu: 0.0.40
codegen_flags: <defaults>
</compile_context>

<pallas_src>
import jax
import jax.numpy as jnp
from jax.experimental import pallas as pl
from jax.experimental.pallas import tpu as pltpu

HIDDEN = 256
LANE = 128
SUBLANE_BF16 = 16          # bf16 packs two rows per sublane -> tile rows in 16s
MAX_BATCH_TILE = 512       # rows per grid step for big batches (few-MB VMEM)


def _round_up(x, m):
    return ((x + m - 1) // m) * m


def _actor_kernel(scale_ref, x_ref, w1_ref, b1_ref, w2_ref, b2_ref,
                  w3_ref, b3_ref, out_ref):
    scale = scale_ref[0]                                   # f32 scalar from SMEM
    # Layer 1: (TB, S)bf16 @ (S, 256)bf16 -> f32 acc, bias + ReLU in f32
    h1 = jnp.dot(x_ref[...], w1_ref[...], preferred_element_type=jnp.float32)
    h1 = jnp.maximum(h1 + b1_ref[...], 0.0)
    # Layer 2: (TB, 256) @ (256, 256)
    h2 = jnp.dot(h1.astype(w2_ref.dtype), w2_ref[...],
                 preferred_element_type=jnp.float32)
    h2 = jnp.maximum(h2 + b2_ref[...], 0.0)
    # Layer 3: (TB, 256) @ (256, A_pad) -> tanh -> scale (lane-dense store)
    h3 = jnp.dot(h2.astype(w3_ref.dtype), w3_ref[...],
                 preferred_element_type=jnp.float32)
    out_ref[...] = (scale * jnp.tanh(h3 + b3_ref[...])).astype(out_ref.dtype)


def actor_forward(state, params, max_action):
    """state: (B, state_dim) float32.  params: dict of w1,b1,w2,b2,w3,b3."""
    B, S = state.shape
    A = params["w3"].shape[1]
    A_pad = _round_up(A, LANE)

    # Batch tiling: pad to bf16 sublane granularity; single grid step for
    # small batches, MAX_BATCH_TILE-row tiles (double-buffered) for large ones.
    B_pad = _round_up(B, SUBLANE_BF16)
    tb = min(MAX_BATCH_TILE, B_pad)
    B_pad = _round_up(B_pad, tb)
    n_tiles = B_pad // tb

    # bf16 MXU operands; biases stay f32 (epilogue runs in f32).
    x = jnp.zeros((B_pad, S), jnp.bfloat16).at[:B].set(state.astype(jnp.bfloat16))
    w1 = params["w1"].astype(jnp.bfloat16)
    w2 = params["w2"].astype(jnp.bfloat16)
    w3 = jnp.zeros((HIDDEN, A_pad), jnp.bfloat16).at[:, :A].set(
        params["w3"].astype(jnp.bfloat16))
    b1 = params["b1"].astype(jnp.float32)
    b2 = params["b2"].astype(jnp.float32)
    b3 = jnp.zeros((1, A_pad), jnp.float32).at[:, :A].set(
        params["b3"].astype(jnp.float32))
    scale = jnp.full((1,), max_action, jnp.float32)

    # Weights/biases: full-array blocks, same block index every grid step
    # -> fetched once, VMEM-resident across the batch loop.
    def resident(arr):
        return pl.BlockSpec(arr.shape, lambda i: (0,) * arr.ndim)

    flops = 2 * B_pad * (S * HIDDEN + HIDDEN * HIDDEN + HIDDEN * A_pad)
    bytes_accessed = (
        x.size * 2 + w1.size * 2 + w2.size * 2 + w3.size * 2
        + b1.size * 4 + b2.size * 4 + b3.size * 4
        + B_pad * A_pad * 4)

    out = pl.pallas_call(
        _actor_kernel,
        out_shape=jax.ShapeDtypeStruct((B_pad, A_pad), jnp.float32),
        grid=(n_tiles,),
        in_specs=[
            pl.BlockSpec(memory_space=pltpu.MemorySpace.SMEM),  # max_action
            pl.BlockSpec((tb, S), lambda i: (i, 0)),            # state tile
            resident(w1), resident(b1),
            resident(w2), resident(b2),
            resident(w3), resident(b3),
        ],
        out_specs=pl.BlockSpec((tb, A_pad), lambda i: (i, 0)),
        compiler_params=pltpu.CompilerParams(
            dimension_semantics=("parallel",)),
        cost_estimate=pl.CostEstimate(
            flops=flops,
            transcendentals=B_pad * A_pad,
            bytes_accessed=bytes_accessed),
    )(scale, x, w1, b1, w2, b2, w3, b3)

    return out[:B, :A]


def init_params(key, state_dim, action_dim):
    """Deterministic synthetic init (PyTorch-Linear-style uniform bounds)."""
    ks = jax.random.split(key, 6)

    def linear(kw, kb, fan_in, fan_out):
        bound = 1.0 / jnp.sqrt(fan_in)
        w = jax.random.uniform(kw, (fan_in, fan_out), jnp.float32, -bound, bound)
        b = jax.random.uniform(kb, (1, fan_out), jnp.float32, -bound, bound)
        return w, b

    w1, b1 = linear(ks[0], ks[1], state_dim, HIDDEN)
    w2, b2 = linear(ks[2], ks[3], HIDDEN, HIDDEN)
    w3, b3 = linear(ks[4], ks[5], HIDDEN, action_dim)
    return {"w1": w1, "b1": b1, "w2": w2, "b2": b2, "w3": w3, "b3": b3}


def actor_forward_ref(state, params, max_action):
    """Pure-f32 reference (matches the PyTorch forward)."""
    h1 = jnp.maximum(state @ params["w1"] + params["b1"], 0.0)
    h2 = jnp.maximum(h1 @ params["w2"] + params["b2"], 0.0)
    return max_action * jnp.tanh(h2 @ params["w3"] + params["b3"])


if __name__ == "__main__":
    key = jax.random.PRNGKey(0)
    k_params, k_state = jax.random.split(key)

    batch, state_dim, action_dim = 2, 16, 8
    max_action = 1.0

    params = init_params(k_params, state_dim, action_dim)
    state = jax.random.normal(k_state, (batch, state_dim), jnp.float32)

    out = jax.block_until_ready(actor_forward(state, params, max_action))
    ref = actor_forward_ref(state, params, max_action)

    assert out.shape == (batch, action_dim)
    # bf16 matmul inputs / f32 accumulate vs. pure-f32 reference
    assert jnp.allclose(out, ref, atol=2e-2, rtol=2e-2), (
        float(jnp.max(jnp.abs(out - ref))))

    print("KERNEL_OK")
</pallas_src>

<mosaic_0001>
module attributes {stable_mosaic.version = 11 : i64} {
  func.func @_actor_kernel(%arg0: i32, %arg1: memref<1xf32, #tpu.memory_space<smem>>, %arg2: memref<16x16xbf16, #tpu.memory_space<vmem>>, %arg3: memref<16x256xbf16, #tpu.memory_space<vmem>>, %arg4: memref<1x256xf32, #tpu.memory_space<vmem>>, %arg5: memref<256x256xbf16, #tpu.memory_space<vmem>>, %arg6: memref<1x256xf32, #tpu.memory_space<vmem>>, %arg7: memref<256x128xbf16, #tpu.memory_space<vmem>>, %arg8: memref<1x128xf32, #tpu.memory_space<vmem>>, %arg9: memref<16x128xf32, #tpu.memory_space<vmem>>) attributes {dimension_semantics = [#tpu.dimension_semantics<parallel>], iteration_bounds = array<i64: 1>, scalar_prefetch = 0 : i64, scratch_operands = 0 : i64, tpu.core_type = #tpu.core_type<tc>, window_params = [{transform_indices = @transform_0, window_bounds = array<i64: 1>}, {transform_indices = @transform_1, window_bounds = array<i64: 16, 16>}, {pipeline_mode = #tpu.pipeline_mode<synchronous>, transform_indices = @transform_2, window_bounds = array<i64: 16, 256>}, {pipeline_mode = #tpu.pipeline_mode<synchronous>, transform_indices = @transform_3, window_bounds = array<i64: 1, 256>}, {pipeline_mode = #tpu.pipeline_mode<synchronous>, transform_indices = @transform_4, window_bounds = array<i64: 256, 256>}, {pipeline_mode = #tpu.pipeline_mode<synchronous>, transform_indices = @transform_5, window_bounds = array<i64: 1, 256>}, {pipeline_mode = #tpu.pipeline_mode<synchronous>, transform_indices = @transform_6, window_bounds = array<i64: 256, 128>}, {pipeline_mode = #tpu.pipeline_mode<synchronous>, transform_indices = @transform_7, window_bounds = array<i64: 1, 128>}, {transform_indices = @transform_8, window_bounds = array<i64: 16, 128>}]} {
    %c0 = arith.constant 0 : index
    %0 = memref.load %arg1[%c0] : memref<1xf32, #tpu.memory_space<smem>>
    %c0_0 = arith.constant 0 : index
    %c0_1 = arith.constant 0 : index
    %1 = vector.load %arg2[%c0_0, %c0_1] : memref<16x16xbf16, #tpu.memory_space<vmem>>, vector<16x16xbf16>
    %c0_2 = arith.constant 0 : index
    %c0_3 = arith.constant 0 : index
    %2 = vector.load %arg3[%c0_2, %c0_3] : memref<16x256xbf16, #tpu.memory_space<vmem>>, vector<16x256xbf16>
    %cst = arith.constant dense<0.000000e+00> : vector<16x256xf32>
    %3 = tpu.matmul %1, %2, %cst {dimension_numbers = #tpu.dot_dimension_numbers<[1], [0], [0], [1], [0, 0, 1, 1], [], []>} : vector<16x16xbf16>, vector<16x256xbf16>, vector<16x256xf32> -> vector<16x256xf32>
    %c0_4 = arith.constant 0 : index
    %c0_5 = arith.constant 0 : index
    %4 = vector.load %arg4[%c0_4, %c0_5] : memref<1x256xf32, #tpu.memory_space<vmem>>, vector<1x256xf32>
    %5 = vector.broadcast %4 : vector<1x256xf32> to vector<16x256xf32>
    %6 = arith.addf %3, %5 : vector<16x256xf32>
    %cst_6 = arith.constant 0.000000e+00 : f32
    %7 = vector.broadcast %cst_6 : f32 to vector<16x256xf32>
    %8 = arith.maximumf %6, %7 : vector<16x256xf32>
    %9 = arith.truncf %8 : vector<16x256xf32> to vector<16x256xbf16>
    %c0_7 = arith.constant 0 : index
    %c0_8 = arith.constant 0 : index
    %10 = vector.load %arg5[%c0_7, %c0_8] : memref<256x256xbf16, #tpu.memory_space<vmem>>, vector<256x256xbf16>
    %cst_9 = arith.constant dense<0.000000e+00> : vector<16x256xf32>
    %11 = tpu.matmul %9, %10, %cst_9 {dimension_numbers = #tpu.dot_dimension_numbers<[1], [0], [0], [1], [0, 0, 1, 1], [], []>} : vector<16x256xbf16>, vector<256x256xbf16>, vector<16x256xf32> -> vector<16x256xf32>
    %c0_10 = arith.constant 0 : index
    %c0_11 = arith.constant 0 : index
    %12 = vector.load %arg6[%c0_10, %c0_11] : memref<1x256xf32, #tpu.memory_space<vmem>>, vector<1x256xf32>
    %13 = vector.broadcast %12 : vector<1x256xf32> to vector<16x256xf32>
    %14 = arith.addf %11, %13 : vector<16x256xf32>
    %cst_12 = arith.constant 0.000000e+00 : f32
    %15 = vector.broadcast %cst_12 : f32 to vector<16x256xf32>
    %16 = arith.maximumf %14, %15 : vector<16x256xf32>
    %17 = arith.truncf %16 : vector<16x256xf32> to vector<16x256xbf16>
    %c0_13 = arith.constant 0 : index
    %c0_14 = arith.constant 0 : index
    %18 = vector.load %arg7[%c0_13, %c0_14] : memref<256x128xbf16, #tpu.memory_space<vmem>>, vector<256x128xbf16>
    %cst_15 = arith.constant dense<0.000000e+00> : vector<16x128xf32>
    %19 = tpu.matmul %17, %18, %cst_15 {dimension_numbers = #tpu.dot_dimension_numbers<[1], [0], [0], [1], [0, 0, 1, 1], [], []>} : vector<16x256xbf16>, vector<256x128xbf16>, vector<16x128xf32> -> vector<16x128xf32>
    %c0_16 = arith.constant 0 : index
    %c0_17 = arith.constant 0 : index
    %20 = vector.load %arg8[%c0_16, %c0_17] : memref<1x128xf32, #tpu.memory_space<vmem>>, vector<1x128xf32>
    %21 = vector.broadcast %20 : vector<1x128xf32> to vector<16x128xf32>
    %22 = arith.addf %19, %21 : vector<16x128xf32>
    %23 = math.tanh %22 : vector<16x128xf32>
    %24 = vector.broadcast %0 : f32 to vector<16x128xf32>
    %25 = arith.mulf %24, %23 : vector<16x128xf32>
    %c0_18 = arith.constant 0 : index
    %c0_19 = arith.constant 0 : index
    %26 = vector.load %arg9[%c0_18, %c0_19] : memref<16x128xf32, #tpu.memory_space<vmem>>, vector<16x128xf32>
    tpu.vector_store %arg9[%c0_18, %c0_19], %25 {strides = array<i32>} : memref<16x128xf32, #tpu.memory_space<vmem>>, vector<16x128xf32>,
    return
  }
  func.func @transform_0(%arg0: i32) -> i32 {
    %c0_i32 = arith.constant 0 : i32
    %c0_i32_0 = arith.constant 0 : i32
    return %c0_i32 : i32
  }
  func.func @transform_1(%arg0: i32) -> (i32, i32) {
    %c0_i32 = arith.constant 0 : i32
    %c0_i32_0 = arith.constant 0 : i32
    return %arg0, %c0_i32 : i32, i32
  }
  func.func @transform_2(%arg0: i32) -> (i32, i32) {
    %c0_i32 = arith.constant 0 : i32
    %c0_i32_0 = arith.constant 0 : i32
    %c0_i32_1 = arith.constant 0 : i32
    return %c0_i32, %c0_i32_0 : i32, i32
  }
  func.func @transform_3(%arg0: i32) -> (i32, i32) {
    %c0_i32 = arith.constant 0 : i32
    %c0_i32_0 = arith.constant 0 : i32
    %c0_i32_1 = arith.constant 0 : i32
    return %c0_i32, %c0_i32_0 : i32, i32
  }
  func.func @transform_4(%arg0: i32) -> (i32, i32) {
    %c0_i32 = arith.constant 0 : i32
    %c0_i32_0 = arith.constant 0 : i32
    %c0_i32_1 = arith.constant 0 : i32
    return %c0_i32, %c0_i32_0 : i32, i32
  }
  func.func @transform_5(%arg0: i32) -> (i32, i32) {
    %c0_i32 = arith.constant 0 : i32
    %c0_i32_0 = arith.constant 0 : i32
    %c0_i32_1 = arith.constant 0 : i32
    return %c0_i32, %c0_i32_0 : i32, i32
  }
  func.func @transform_6(%arg0: i32) -> (i32, i32) {
    %c0_i32 = arith.constant 0 : i32
    %c0_i32_0 = arith.constant 0 : i32
    %c0_i32_1 = arith.constant 0 : i32
    return %c0_i32, %c0_i32_0 : i32, i32
  }
  func.func @transform_7(%arg0: i32) -> (i32, i32) {
    %c0_i32 = arith.constant 0 : i32
    %c0_i32_0 = arith.constant 0 : i32
    %c0_i32_1 = arith.constant 0 : i32
    return %c0_i32, %c0_i32_0 : i32, i32
  }
  func.func @transform_8(%arg0: i32) -> (i32, i32) {
    %c0_i32 = arith.constant 0 : i32
    %c0_i32_0 = arith.constant 0 : i32
    return %arg0, %c0_i32 : i32, i32
  }
}

</mosaic_0001>

<bundles_post_ra>
// kernel: tpu_custom_call.1
= control target key start
LH: loop header
LB: loop body
LE: loop exit
PB: predicated region body
PF: predicated region fallthrough
CT: control target
= control target key end

     0   :  { %14 = vsyncpa [#allocation4], 0  ;;  %s983_s0 = inlined_call_operand.<no memory space> [shape: f32[1], index: 0, kind: input, shape index: {}]   ;;  %s984_s1 = inlined_call_operand.hbm [shape: bf16[16,16], index: 1, kind: input, shape index: {}]   ;;  %s985_s2 = inlined_call_operand.hbm [shape: bf16[16,256], index: 2, kind: input, shape index: {}]   ;;  %s986_s3 = inlined_call_operand.vmem [shape: f32[1,256], index: 3, kind: input, shape index: {}]   ;;  %s987_s4 = inlined_call_operand.hbm [shape: bf16[256,256], index: 4, kind: input, shape index: {}]   ;;  %s988_s5 = inlined_call_operand.vmem [shape: f32[1,256], index: 5, kind: input, shape index: {}]   ;;  %s989_s6 = inlined_call_operand.hbm [shape: bf16[256,128], index: 6, kind: input, shape index: {}]   ;;  %s990_s7 = inlined_call_operand.vmem [shape: f32[1,128], index: 7, kind: input, shape index: {}]   ;;  %s991_s8 = inlined_call_operand.hbm [shape: f32[16,128], index: 8, kind: output, shape index: {}]  }
   0x1   :  { %15 = vsyncpa [#allocation7], 0 }
   0x2   :  { %16 = vsyncpa [#allocation10], 0 }
   0x3   :  { %17 = vsyncpa [#allocation5], 0  ;;  %s892_s27 = smov [#allocation6]  }
   0x4   :  { %s37_s28 = sshll.u32 %s892_s27, 4  ;;  %s38_s28 = int_to_ptr.vmem [resolvable:$true] %s37_s28 }
   0x5   :  { %s792_s29 = scalar_lea.vmem %s38_s28, 256  ;;  %p797_p1 = scmp.lt.s32.totalorder %s38_s28, %s38_s28 }
   0x6   :  { %p793_p0 = scmp.ne.s32.totalorder %s38_s28, %s792_s29  ;;  %p798_p2 = scmp.lt.s32.totalorder %s792_s29, %s792_s29 }
   0x8   :  { %p799_p3 = por %p798_p2, %p797_p1 }
   0xa   :  { %p800_p4 = pnand %p799_p3, %p793_p0 }
   0xc   :  { %803 = shalt.err (!%p800_p4)
}
   0xd   :  { %s893_s30 = smov 128   ;;  %s894_s9 = smov 8  }
   0xe   :  { %43 = dma.hbm_to_vmem [thread:$0]  %s985_s2, 256, %s38_s28, [#allocation7], %s893_s30, %s893_s30, %s894_s9  }
   0xf   :  { %s895_s12 = smov [#allocation3]  }
  0x10   :  { %s25_s13 = sshll.u32 %s895_s12, 4  ;;  %s26_s13 = int_to_ptr.vmem [resolvable:$true] %s25_s13 }
  0x11   :  { %s812_s14 = scalar_lea.vmem %s26_s13, 128  ;;  %p817_p6 = scmp.lt.s32.totalorder %s26_s13, %s26_s13 }
  0x12   :  { %p813_p5 = scmp.ne.s32.totalorder %s26_s13, %s812_s14  ;;  %p818_p7 = scmp.lt.s32.totalorder %s812_s14, %s812_s14 }
  0x14   :  { %p819_p8 = por %p818_p7, %p817_p6 }
  0x16   :  { %p820_p9 = pnand %p819_p8, %p813_p5 }
  0x18   :  { %823 = shalt.err (!%p820_p9)
}
  0x19   :  { %s896_s15 = smov 64   ;;  %s897_s16 = smov 4  }
  0x1a   :  { %31 = dma.hbm_to_vmem [thread:$0]  %s984_s1, 128, %s26_s13, [#allocation4], %s896_s15, %s896_s15, %s897_s16  }
  0x1b   :  { %s898_s19 = smov [#allocation8]   ;;  %s899_s21 = smov [#allocation9]  }
  0x1c   :  { %s51_s20 = sshll.u32 %s898_s19, 4  ;;  %s65_s2 = sshll.u32 %s899_s21, 4  ;;  %s52_s20 = int_to_ptr.vmem [resolvable:$true] %s51_s20  ;;  %s66_s2 = int_to_ptr.vmem [resolvable:$true] %s65_s2 }
  0x1d   :  { %s832_s22 = scalar_lea.vmem %s52_s20, 4096  ;;  %p837_p11 = scmp.lt.s32.totalorder %s52_s20, %s52_s20 }
  0x1e   :  { %p833_p10 = scmp.ne.s32.totalorder %s52_s20, %s832_s22  ;;  %p838_p12 = scmp.lt.s32.totalorder %s832_s22, %s832_s22 }
  0x20   :  { %p839_p13 = por %p838_p12, %p837_p11 }
  0x22   :  { %p840_p0 = pnand %p839_p13, %p833_p10 }
  0x24   :  { %843 = shalt.err (!%p840_p0)
}
  0x25   :  { %57 = dma.hbm_to_vmem [thread:$0]  %s987_s4, 4096, %s52_s20, [#allocation7], %s893_s30, %s893_s30, %s894_s9  }
  0x26   :  { %s852_s1 = scalar_lea.vmem %s66_s2, 2048  ;;  %p857_p2 = scmp.lt.s32.totalorder %s66_s2, %s66_s2 }
  0x27   :  { %p853_p1 = scmp.ne.s32.totalorder %s66_s2, %s852_s1  ;;  %p858_p3 = scmp.lt.s32.totalorder %s852_s1, %s852_s1 }
  0x29   :  { %p859_p4 = por %p858_p3, %p857_p2 }
  0x2b   :  { %p860_p5 = pnand %p859_p4, %p853_p1 }
  0x2d   :  { %863 = shalt.err (!%p860_p5)
}
  0x2e   :  { %71 = dma.hbm_to_vmem [thread:$0]  %s989_s6, 2048, %s66_s2, [#allocation10], %s896_s15, %s896_s15, %s897_s16  }
  0x2f   :  { %884 = dma.done.wait [#allocation4], 128  }
  0x30   :  { %885 = vsyncadd [#allocation4], 4294967168 }
  0x31   :  { %886 = dma.done.wait [#allocation7], 4352  }
  0x32   :  { %887 = vsyncadd [#allocation7], 4294962944 }
  0x33   :  { %888 = dma.done.wait [#allocation10], 2048  }
  0x34   :  { %889 = vsyncadd [#allocation10], 4294965248  ;;  %v900_v0 = vmov 0   ;;  %v712_v1 = vld [vmem:[#allocation6 + $0x4] ss:$8 sps:$4 sm:$0xff]   ;;  %v715_v3 = vld [vmem:[#allocation3] sm:$0xff]   ;;  %v94_v46 = vlaneseq }
  0x35   :  { %155 = vmatprep.mubr.bf16.mxu0 %v900_v0  ;;  %v714_v2 = vld [vmem:[#allocation6] ss:$8 sps:$4 sm:$0xff]   ;;  %137 = vmatprep.subr.bf16.mxu0 %v712_v1  ;;  %vm119_vm0 = vcmask 130048   ;;  %v716_v4 = vld [vmem:[#allocation8 + $0x74] ss:$8 sps:$4 sm:$0xff]   ;;  %v768_v40 = vld [vmem:[#allocation9 + $0x68] sm:$0xff]  }
  0x36   :  { %138 = vmatpush1.bf16.msra.mxu0 %v714_v2  ;;  %v718_v5 = vld [vmem:[#allocation8 + $0x70] ss:$8 sps:$4 sm:$0xff]   ;;  %v719_v6 = vld [vmem:[#allocation8 + $0x64] ss:$8 sps:$4 sm:$0xff]   ;;  %376 = vmatprep.subr.bf16.mxu1 %v716_v4  ;;  %v721_v7 = vld [vmem:[#allocation8 + $0x60] ss:$8 sps:$4 sm:$0xff]  }
  0x37   :  { %377 = vmatpush1.bf16.msra.mxu1 %v718_v5  ;;  %v722_v8 = vld [vmem:[#allocation8 + $0x54] ss:$8 sps:$4 sm:$0xff]   ;;  %v724_v9 = vld [vmem:[#allocation8 + $0x50] ss:$8 sps:$4 sm:$0xff]   ;;  %v725_v10 = vld [vmem:[#allocation8 + $0x44] ss:$8 sps:$4 sm:$0xff]  }
  0x38   :  { %378 = vmatprep.subr.bf16.mxu1 %v719_v6  ;;  %v727_v11 = vld [vmem:[#allocation8 + $0x40] ss:$8 sps:$4 sm:$0xff]   ;;  %v728_v12 = vld [vmem:[#allocation8 + $0x34] ss:$8 sps:$4 sm:$0xff]   ;;  %v730_v13 = vld [vmem:[#allocation8 + $0x30] ss:$8 sps:$4 sm:$0xff]  }
  0x39   :  { %630 = vmatmul.mubr.msk.bf16.vlgmr.msra.gmra.mxu0 %vm119_vm0, %v715_v3  ;;  %v731_v14 = vld [vmem:[#allocation8 + $0x24] ss:$8 sps:$4 sm:$0xff]   ;;  %v733_v15 = vld [vmem:[#allocation8 + $0x20] ss:$8 sps:$4 sm:$0xff]   ;;  %v734_v16 = vld [vmem:[#allocation8 + $0x14] ss:$8 sps:$4 sm:$0xff]  }
  0x3a   :  { %v736_v17 = vld [vmem:[#allocation8 + $0x10] ss:$8 sps:$4 sm:$0xff]   ;;  %v737_v18 = vld [vmem:[#allocation8 + $0x4] ss:$8 sps:$4 sm:$0xff]   ;;  %v739_v19 = vld [vmem:[#allocation8] ss:$8 sps:$4 sm:$0xff]  }
  0x3b   :  { %379 = vmatpush1.bf16.msra.mxu1 %v721_v7  ;;  %v740_v20 = vld [vmem:[#allocation8 + $0xf4] ss:$8 sps:$4 sm:$0xff]   ;;  %v742_v21 = vld [vmem:[#allocation8 + $0xf0] ss:$8 sps:$4 sm:$0xff]   ;;  %v743_v22 = vld [vmem:[#allocation8 + $0xe4] ss:$8 sps:$4 sm:$0xff]  }
  0x3c   :  { %380 = vmatprep.subr.bf16.mxu1 %v722_v8  ;;  %v745_v23 = vld [vmem:[#allocation8 + $0xe0] ss:$8 sps:$4 sm:$0xff]   ;;  %v746_v24 = vld [vmem:[#allocation8 + $0xd4] ss:$8 sps:$4 sm:$0xff]   ;;  %v748_v25 = vld [vmem:[#allocation8 + $0xd0] ss:$8 sps:$4 sm:$0xff]  }
  0x3d   :  { %v749_v26 = vld [vmem:[#allocation8 + $0xc4] ss:$8 sps:$4 sm:$0xff]   ;;  %v751_v27 = vld [vmem:[#allocation8 + $0xc0] ss:$8 sps:$4 sm:$0xff]   ;;  %v752_v28 = vld [vmem:[#allocation8 + $0xb4] ss:$8 sps:$4 sm:$0xff]  }
  0x3e   :  { %v754_v29 = vld [vmem:[#allocation8 + $0xb0] ss:$8 sps:$4 sm:$0xff]   ;;  %v755_v30 = vld [vmem:[#allocation8 + $0xa4] ss:$8 sps:$4 sm:$0xff]   ;;  %v757_v31 = vld [vmem:[#allocation8 + $0xa0] ss:$8 sps:$4 sm:$0xff]  }
  0x3f   :  { %381 = vmatpush1.bf16.msra.mxu1 %v724_v9  ;;  %v758_v32 = vld [vmem:[#allocation8 + $0x94] ss:$8 sps:$4 sm:$0xff]   ;;  %v760_v33 = vld [vmem:[#allocation8 + $0x90] ss:$8 sps:$4 sm:$0xff]   ;;  %v761_v34 = vld [vmem:[#allocation8 + $0x84] ss:$8 sps:$4 sm:$0xff]  }
  0x40   :  { %382 = vmatprep.subr.bf16.mxu1 %v725_v10  ;;  %v763_v35 = vld [vmem:[#allocation8 + $0x80] ss:$8 sps:$4 sm:$0xff]   ;;  %v764_v36 = vld [vmem:[#allocation9 + $0x78] sm:$0xff]   ;;  %v766_v38 = vld [vmem:[#allocation9 + $0x70] sm:$0xff]   ;;  %v95_v47 = vshrl.u32 %v94_v46, 7  ;;  %s901_s11 = smov [#allocation11]  }
  0x41   :  { %v765_v37 = vld [vmem:[#allocation9 + $0x38] sm:$0xff]   ;;  %680 = vmatprep.subr.bf16.mxu0 %v764_v36  ;;  %v767_v39 = vld [vmem:[#allocation9 + $0x30] sm:$0xff]   ;;  %v769_v41 = vld [vmem:[#allocation9 + $0x28] sm:$0xff]   ;;  %s613_s12 = sshll.u32 %s901_s11, 4  ;;  %s614_s12 = int_to_ptr.vmem [resolvable:$true] %s613_s12 }
  0x42   :  { %681 = vmatpush3.bf16.msra.mxu0 %v765_v37  ;;  %v770_v42 = vld [vmem:[#allocation9 + $0x60] sm:$0xff]   ;;  %v772_v44 = vld [vmem:[#allocation9 + $0x58] sm:$0xff]   ;;  %v100_v48 = vsub.s32 1, %v95_v47  ;;  %v96_v49 = vsub.s32 0, %v95_v47  ;;  %v92_v50 = vld [vmem:[%s986_s3] sm:$0x3]  ;;  %p869_p7 = scmp.lt.s32.totalorder %s614_s12, %s614_s12 }
  0x43   :  { %383 = vmatpush1.bf16.msra.mxu1 %v727_v11  ;;  %682 = vmatprep.subr.bf16.mxu0 %v766_v38  ;;  %v771_v43 = vld [vmem:[#allocation9 + $0x20] sm:$0xff]   ;;  %v773_v45 = vld [vmem:[#allocation9 + $0x18] sm:$0xff]   ;;  %v774_v3 = vld [vmem:[#allocation9 + $0x50] sm:$0xff]  }
  0x44   :  { %384 = vmatprep.subr.bf16.mxu1 %v728_v12  ;;  %v101_v52 = vrot.slane %v92_v50, %v100_v48  ;;  %v97_v53 = vrot.slane %v92_v50, %v96_v49  ;;  %v775_v4 = vld [vmem:[#allocation9 + $0x10] sm:$0xff]   ;;  %v776_v5 = vld [vmem:[#allocation9 + $0x48] sm:$0xff]   ;;  %v778_v7 = vld [vmem:[#allocation9 + $0x40] sm:$0xff]  }
  0x45   :  { %v777_v6 = vld [vmem:[#allocation9 + $0x8] sm:$0xff]   ;;  %v779_v8 = vld [vmem:[#allocation9] sm:$0xff]  }
  0x46   :  { %683 = vmatpush3.bf16.msra.mxu0 %v767_v39  ;;  %v204_v9 = vld [vmem:[%s988_s5] sm:$0x3] }
  0x47   :  { %385 = vmatpush1.bf16.msra.mxu1 %v730_v13  ;;  %684 = vmatprep.subr.bf16.mxu0 %v768_v40  ;;  %v213_v11 = vrot.slane %v204_v9, %v100_v48  ;;  %v209_v12 = vrot.slane %v204_v9, %v96_v49 }
  0x48   :  { %386 = vmatprep.subr.bf16.mxu1 %v731_v14 }
  0x4a   :  { %685 = vmatpush3.bf16.msra.mxu0 %v769_v41 }
  0x4b   :  { %387 = vmatpush1.bf16.msra.mxu1 %v733_v15  ;;  %686 = vmatprep.subr.bf16.mxu0 %v770_v42 }
  0x4c   :  { %388 = vmatprep.subr.bf16.mxu1 %v734_v16 }
  0x4e   :  { %687 = vmatpush3.bf16.msra.mxu0 %v771_v43 }
  0x4f   :  { %389 = vmatpush1.bf16.msra.mxu1 %v736_v17  ;;  %688 = vmatprep.subr.bf16.mxu0 %v772_v44 }
  0x50   :  { %390 = vmatprep.subr.bf16.mxu1 %v737_v18 }
  0x52   :  { %689 = vmatpush3.bf16.msra.mxu0 %v773_v45 }
  0x53   :  { %391 = vmatpush1.bf16.msra.mxu1 %v739_v19  ;;  %690 = vmatprep.subr.bf16.mxu0 %v774_v3 }
  0x54   :  { %392 = vmatprep.subr.bf16.mxu1 %v740_v20 }
  0x56   :  { %691 = vmatpush3.bf16.msra.mxu0 %v775_v4 }
  0x57   :  { %393 = vmatpush2.bf16.msra.mxu1 %v742_v21  ;;  %692 = vmatprep.subr.bf16.mxu0 %v776_v5 }
  0x58   :  { %394 = vmatprep.subr.bf16.mxu1 %v743_v22 }
  0x5a   :  { %693 = vmatpush3.bf16.msra.mxu0 %v777_v6 }
  0x5b   :  { %395 = vmatpush2.bf16.msra.mxu1 %v745_v23  ;;  %694 = vmatprep.subr.bf16.mxu0 %v778_v7 }
  0x5c   :  { %396 = vmatprep.subr.bf16.mxu1 %v746_v24 }
  0x5e   :  { %695 = vmatpush3.bf16.msra.mxu0 %v779_v8 }
  0x5f   :  { %397 = vmatpush2.bf16.msra.mxu1 %v748_v25 }
  0x60   :  { %398 = vmatprep.subr.bf16.mxu1 %v749_v26 }
  0x63   :  { %399 = vmatpush2.bf16.msra.mxu1 %v751_v27  ;;  %v663_v27 = vld [vmem:[%s990_s7] ss:$0 sm:$0xff]  ;;  %s864_s7 = scalar_lea.vmem %s614_s12, 256 }
  0x64   :  { %400 = vmatprep.subr.bf16.mxu1 %v752_v28  ;;  %p865_p6 = scmp.ne.s32.totalorder %s614_s12, %s864_s7  ;;  %p870_p8 = scmp.lt.s32.totalorder %s864_s7, %s864_s7 }
  0x66   :  { %p871_p9 = por %p870_p8, %p869_p7 }
  0x67   :  { %401 = vmatpush2.bf16.msra.mxu1 %v754_v29 }
  0x68   :  { %402 = vmatprep.subr.bf16.mxu1 %v755_v30  ;;  %p872_p10 = pnand %p871_p9, %p865_p6 }
  0x6b   :  { %403 = vmatpush2.bf16.msra.mxu1 %v757_v31 }
  0x6c   :  { %404 = vmatprep.subr.bf16.mxu1 %v758_v32 }
  0x6f   :  { %405 = vmatpush2.bf16.msra.mxu1 %v760_v33 }
  0x70   :  { %406 = vmatprep.subr.bf16.mxu1 %v761_v34 }
  0x73   :  { %407 = vmatpush2.bf16.msra.mxu1 %v763_v35  ;;  %v603_v35 = vstv %s983_s0 }
  0xf9   :  { %v157_v51 = vpop.f32.mrf.mxu0 }
  0xfa   :  { %v158_v58 = vadd.f32 %v157_v51, %v97_v53 }
  0xfb   :  { %v159_v54 = vpop.f32.mrf.mxu0 }
  0xfc   :  { %v160_v56 = vadd.f32 %v159_v54, %v101_v52  ;;  %v166_v0 = vmax.f32 %v158_v58, 0.0 }
  0xfd   :  { %v161_v55 = vpop.f32.mrf.mxu0 }
  0xfe   :  { %v162_v57 = vadd.f32 %v161_v55, %v97_v53  ;;  %v167_v62 = vmax.f32 %v160_v56, 0.0 }
  0xff   :  { %v163_v59 = vpop.f32.mrf.mxu0 }
 0x100   :  { %v164_v60 = vadd.f32 %v163_v59, %v101_v52  ;;  %v168_v61 = vmax.f32 %v162_v57, 0.0 }
 0x102   :  { %v169_v63 = vmax.f32 %v164_v60, 0.0  ;;  %v170_v2 = vpack.c.bf16 %v168_v61, %v166_v0 }
 0x104   :  { %v171_v1 = vpack.c.bf16 %v169_v63, %v167_v62 }
 0x106   :  { %408 = vmatprep.mubr.bf16.mxu1 %v171_v1 }
 0x107   :  { %409 = vmatmul.mubr.bf16.vlgmr.msra.gmra.mxu1 %v170_v2 }
 0x1c7   :  { %v410_v10 = vpop.f32.mrf.mxu1 }
 0x1c8   :  { %v411_v17 = vadd.f32 %v410_v10, %v209_v12 }
 0x1c9   :  { %v412_v13 = vpop.f32.mrf.mxu1 }
 0x1ca   :  { %v413_v15 = vadd.f32 %v412_v13, %v213_v11  ;;  %v419_v23 = vmax.f32 %v411_v17, 0.0 }
 0x1cb   :  { %v414_v14 = vpop.f32.mrf.mxu1 }
 0x1cc   :  { %v415_v16 = vadd.f32 %v414_v14, %v209_v12  ;;  %v420_v21 = vmax.f32 %v413_v15, 0.0 }
 0x1cd   :  { %v416_v18 = vpop.f32.mrf.mxu1 }
 0x1ce   :  { %v417_v19 = vadd.f32 %v416_v18, %v213_v11  ;;  %v421_v20 = vmax.f32 %v415_v16, 0.0 }
 0x1d0   :  { %v422_v22 = vmax.f32 %v417_v19, 0.0  ;;  %v423_v25 = vpack.c.bf16 %v421_v20, %v419_v23 }
 0x1d2   :  { %v424_v24 = vpack.c.bf16 %v422_v22, %v420_v21 }
 0x1d4   :  { %592 = vmatprep.mubr.bf16.mxu0 %v424_v24 }
 0x1d5   :  { %593 = vmatmul.mubr.bf16.vlgmr.msra.gmra.mxu0 %v423_v25 }
 0x295   :  { %v696_v26 = vpop.f32.mrf.mxu0 }
 0x297   :  { %v697_v28 = vpop.f32.mrf.mxu0 }
 0x298   :  { %v698_v29 = vadd.f32 %v697_v28, %v696_v26 }
 0x299   :  { %v699_v30 = vpop.f32.mrf.mxu0 }
 0x29a   :  { %v595_v31 = vadd.f32 %v698_v29, %v663_v27 }
 0x29b   :  { %v700_v32 = vpop.f32.mrf.mxu0 }
 0x29c   :  { %780 = vtanh.f32 %v595_v31  ;;  %v701_v33 = vadd.f32 %v700_v32, %v699_v30 }
 0x29e   :  { %v598_v34 = vadd.f32 %v701_v33, %v663_v27 }
 0x2a0   :  { %782 = vtanh.f32 %v598_v34 }
 0x2a9   :  { %v781_v36 = vpop.eup %780 }
 0x2aa   :  { %v604_v37 = vmul.f32 %v781_v36, %v603_v35 }
 0x2ac   :  { %606 = vst [vmem:[#allocation11] sm:$0xff] %v604_v37 }
 0x2ad   :  { %v783_v38 = vpop.eup %782 }
 0x2ae   :  { %v605_v39 = vmul.f32 %v783_v38, %v603_v35 }
 0x2b0   :  { %607 = vst [vmem:[#allocation11 + $0x8] sm:$0xff] %v605_v39 }
 0x2b1   :  { %875 = shalt.err (!%p872_p10)
}
 0x2b2   :  { %619 = dma.vmem_to_hbm [thread:$0]  %s614_s12, 256, %s991_s8, [#allocation5], %s893_s30, %s893_s30, %s894_s9  }
 0x2b3   :  { %890 = dma.done.wait [#allocation5], 256  }
 0x2b4   :  { %891 = vsyncadd [#allocation5], 4294967040 }
 0x2b5   :  { %623 = vsyncpa [#allocation4], 1 }
 0x2b6   :  { %624 = vsyncpa [#allocation7], 1 }
 0x2b7   :  { %625 = vsyncpa [#allocation10], 1 }
 0x2b8   :  { %626 = vsyncpa [#allocation5], 1 }

</bundles_post_ra>
